<compile_context>
chip_gen: v6e
topology: v6e:2x2x1
jax: 0.10.0
libtpu: 0.0.40
codegen_flags: <defaults>
</compile_context>

<pallas_src>
import functools

import jax
import jax.numpy as jnp
from jax.experimental import pallas as pl
from jax.experimental.pallas import tpu as pltpu

_G = 8                                   # rows packed per kernel row (lane-dense)
_VMEM_LIMIT_BYTES = 32 * 1024 * 1024     # >= v5e's 16 MiB scoped default, < v7x 64 MiB
_TILE_BUDGET_BYTES = 6 * 1024 * 1024     # single-buffered in+out bytes per grid step
_TM_CAP = 4096                           # hard cap on grouped rows per tile


def _round_up(x: int, m: int) -> int:
    return ((x + m - 1) // m) * m


def _round_down(x: int, m: int) -> int:
    return (x // m) * m


def build_interp_matrix(in_size: int, out_size: int, dtype=jnp.float32):
    """W such that (x @ W)[j] == F.interpolate(x, out_size, mode='linear',
    align_corners=True)[j]."""
    if out_size == 1 or in_size == 1:
        pos = jnp.zeros((out_size,), dtype=jnp.float32)
    else:
        pos = jnp.arange(out_size, dtype=jnp.float32) * (
            (in_size - 1) / (out_size - 1)
        )
    lo = jnp.clip(jnp.floor(pos).astype(jnp.int32), 0, in_size - 1)
    hi = jnp.clip(lo + 1, 0, in_size - 1)
    frac = pos - lo.astype(jnp.float32)
    cols = jnp.arange(out_size)
    w = jnp.zeros((in_size, out_size), dtype=jnp.float32)
    w = w.at[lo, cols].add(1.0 - frac)
    w = w.at[hi, cols].add(frac)
    return w.astype(dtype)


def _interp_kernel(x_ref, w_ref, o_ref):
    # x_ref: (tm, G*F_in), w_ref: (G*F_in, G*F_out), o_ref: (tm, G*F_out)
    o_ref[...] = jnp.dot(
        x_ref[...], w_ref[...], preferred_element_type=jnp.float32
    ).astype(o_ref.dtype)


@functools.partial(
    jax.jit, static_argnames=("output_size", "batch_first", "trainable")
)
def time_distributed_interpolation(
    observation, mask=None, *, output_size: int, batch_first: bool = False,
    trainable: bool = False,
):
    orig_shape = observation.shape
    in_size = orig_shape[-1]

    x2d = observation.reshape(-1, in_size)
    n_rows = x2d.shape[0]

    # Interpolation matrix with the sigmoid gate folded in (keeps the kernel a
    # pure streaming matmul; sigmoid(0)*2 == 1, so trainable=False just skips
    # the fold).  NOTE: for bf16 inputs the gated W is quantized to bf16 before
    # the matmul (one-ulp-of-W deliberate numerics difference vs. the f32 ref).
    w = build_interp_matrix(in_size, output_size, jnp.float32)
    if trainable:
        gate = jax.nn.sigmoid(mask.astype(jnp.float32)) * 2.0
        w = w * gate[None, :]

    # Always take the lane-dense G=8 packed path: pad the row count up to a
    # multiple of G with zero rows (static decision; no-op when already
    # aligned) and slice the padding off at the end.  This removes the old
    # G<8 fallback that produced 16/32-lane masked partial stores.
    n_pad = _round_up(n_rows, _G)
    if n_pad != n_rows:
        x2d = jnp.pad(x2d, ((0, n_pad - n_rows), (0, 0)))
    n_g = n_pad // _G
    kin = _G * in_size
    kout = _G * output_size

    # Block-diagonal interpolation matrix; stream in the input's native dtype.
    w_bd = jnp.kron(jnp.eye(_G, dtype=jnp.float32), w).astype(x2d.dtype)
    x_g = x2d.reshape(n_g, kin)  # row-major => free relayout

    # Tile sizing:
    #  - cap derived from a ~6 MiB single-buffer in+out budget (~12 MiB
    #    double-buffered), hard-capped at 4096 grouped rows;
    #  - at least 2 grid steps whenever there is enough work, so both v7x
    #    TensorCores are used (no-op on single-TC v5e/v6e).
    dtype_bytes = jnp.dtype(observation.dtype).itemsize
    row_bytes = (kin + kout) * dtype_bytes
    tm_cap = max(8, min(_TM_CAP, _round_down(_TILE_BUDGET_BYTES // row_bytes, 8)))
    tm = min(tm_cap, max(8, _round_up(pl.cdiv(n_g, 2), 8)))
    grid = (pl.cdiv(n_g, tm),)

    cost = pl.CostEstimate(
        flops=2 * n_g * kin * kout,
        transcendentals=0,
        bytes_accessed=(n_g * (kin + kout) + kin * kout) * dtype_bytes,
    )

    out_g = pl.pallas_call(
        _interp_kernel,
        out_shape=jax.ShapeDtypeStruct((n_g, kout), observation.dtype),
        grid_spec=pltpu.PrefetchScalarGridSpec(
            num_scalar_prefetch=0,
            grid=grid,
            in_specs=[
                pl.BlockSpec((tm, kin), lambda i: (i, 0)),
                # Constant index_map: Pallas DMAs W once and skips re-fetch
                # across grid steps; its small second buffer is covered by the
                # VMEM budget above.
                pl.BlockSpec((kin, kout), lambda i: (0, 0)),
            ],
            out_specs=pl.BlockSpec((tm, kout), lambda i: (i, 0)),
        ),
        compiler_params=pltpu.CompilerParams(
            dimension_semantics=("parallel",),
            vmem_limit_bytes=_VMEM_LIMIT_BYTES,
        ),
        cost_estimate=cost,
    )(x_g, w_bd)

    y2d = out_g.reshape(n_pad, output_size)
    if n_pad != n_rows:
        y2d = y2d[:n_rows]

    if observation.ndim <= 2:
        return y2d.reshape(orig_shape[:-1] + (output_size,))
    if batch_first:
        return y2d.reshape(orig_shape[0], -1, output_size)
    return y2d.reshape(-1, orig_shape[1], output_size)


def _reference(observation, mask, output_size, batch_first, trainable):
    """Pure-JAX reference of the PyTorch forward."""
    in_size = observation.shape[-1]
    x2d = observation.reshape(-1, in_size).astype(jnp.float32)
    w = build_interp_matrix(in_size, output_size)
    y = x2d @ w
    if trainable:
        y = y * jax.nn.sigmoid(mask.astype(jnp.float32))[None, :] * 2.0
    y = y.astype(observation.dtype)
    if observation.ndim <= 2:
        return y.reshape(observation.shape[:-1] + (output_size,))
    if batch_first:
        return y.reshape(observation.shape[0], -1, output_size)
    return y.reshape(-1, observation.shape[1], output_size)


if __name__ == "__main__":
    key = jax.random.PRNGKey(0)
    output_size = 32

    # Case 1: (time=8, batch=2, features=16), batch_first=False, trainable=True.
    # n_rows=16 is already a multiple of 8 -> no padding, lane-dense
    # 128-wide input / 256-wide output tiles.
    seq, batch, feat = 8, 2, 16
    observation = jax.random.normal(key, (seq, batch, feat), dtype=jnp.float32)
    mask = jnp.zeros((output_size,), dtype=jnp.float32)  # nn.Parameter zeros init

    out = time_distributed_interpolation(
        observation, mask,
        output_size=output_size, batch_first=False, trainable=True,
    )
    out = jax.block_until_ready(out)
    ref = _reference(observation, mask, output_size, False, True)
    assert out.shape == (seq, batch, output_size), out.shape
    assert jnp.allclose(out, ref, atol=1e-5, rtol=1e-5), "mismatch vs reference (case 1)"

    # Case 2: odd row count (15 rows -> padded to 16, padding sliced off),
    # batch_first=True, trainable=False.  Exercises the always-G=8 padded path.
    observation2 = jax.random.normal(
        jax.random.PRNGKey(1), (3, 5, feat), dtype=jnp.float32
    )
    out2 = time_distributed_interpolation(
        observation2, None,
        output_size=output_size, batch_first=True, trainable=False,
    )
    out2 = jax.block_until_ready(out2)
    ref2 = _reference(observation2, None, output_size, True, False)
    assert out2.shape == (3, 5, output_size), out2.shape
    assert jnp.allclose(out2, ref2, atol=1e-5, rtol=1e-5), "mismatch vs reference (case 2)"

    print("KERNEL_OK")
</pallas_src>

<mosaic_0001>
module attributes {stable_mosaic.version = 11 : i64} {
  func.func private @main(%arg0: i32) attributes {dimension_semantics = [#tpu.dimension_semantics<core_parallel>], iteration_bounds = array<i64: 2>, tpu.core_type = #tpu.core_type<sc_scalar_subcore>, window_params = []} {
    return
  }
}

module attributes {stable_mosaic.version = 11 : i64} {
  func.func private @main(%arg0: i32) attributes {dimension_semantics = [#tpu.dimension_semantics<core_parallel>], iteration_bounds = array<i64: 2>, tpu.core_type = #tpu.core_type<sc_scalar_subcore>, window_params = []} {
    return
  }
}

module attributes {stable_mosaic.version = 11 : i64} {
  func.func @_interp_kernel(%arg0: i32, %arg1: memref<8x128xf32, #tpu.memory_space<vmem>>, %arg2: memref<128x256xf32, #tpu.memory_space<vmem>>, %arg3: memref<8x256xf32, #tpu.memory_space<vmem>>) attributes {dimension_semantics = [#tpu.dimension_semantics<parallel>], iteration_bounds = array<i64: 1>, scalar_prefetch = 0 : i64, scratch_operands = 0 : i64, tpu.core_type = #tpu.core_type<tc>, window_params = [{transform_indices = @transform_0, window_bounds = array<i64: 8, 128>}, {pipeline_mode = #tpu.pipeline_mode<synchronous>, transform_indices = @transform_1, window_bounds = array<i64: 128, 256>}, {transform_indices = @transform_2, window_bounds = array<i64: 8, 256>}]} {
    %c0 = arith.constant 0 : index
    %c0_0 = arith.constant 0 : index
    %0 = vector.load %arg1[%c0, %c0_0] : memref<8x128xf32, #tpu.memory_space<vmem>>, vector<8x128xf32>
    %c0_1 = arith.constant 0 : index
    %c0_2 = arith.constant 0 : index
    %1 = vector.load %arg2[%c0_1, %c0_2] : memref<128x256xf32, #tpu.memory_space<vmem>>, vector<128x256xf32>
    %cst = arith.constant dense<0.000000e+00> : vector<8x256xf32>
    %2 = tpu.matmul %0, %1, %cst {dimension_numbers = #tpu.dot_dimension_numbers<[1], [0], [0], [1], [0, 0, 1, 1], [], []>} : vector<8x128xf32>, vector<128x256xf32>, vector<8x256xf32> -> vector<8x256xf32>
    %c0_3 = arith.constant 0 : index
    %c0_4 = arith.constant 0 : index
    %3 = vector.load %arg3[%c0_3, %c0_4] : memref<8x256xf32, #tpu.memory_space<vmem>>, vector<8x256xf32>
    tpu.vector_store %arg3[%c0_3, %c0_4], %2 {strides = array<i32>} : memref<8x256xf32, #tpu.memory_space<vmem>>, vector<8x256xf32>,
    return
  }
  func.func @transform_0(%arg0: i32) -> (i32, i32) {
    %c0_i32 = arith.constant 0 : i32
    %c0_i32_0 = arith.constant 0 : i32
    return %arg0, %c0_i32 : i32, i32
  }
  func.func @transform_1(%arg0: i32) -> (i32, i32) {
    %c0_i32 = arith.constant 0 : i32
    %c0_i32_0 = arith.constant 0 : i32
    %c0_i32_1 = arith.constant 0 : i32
    return %c0_i32, %c0_i32_0 : i32, i32
  }
  func.func @transform_2(%arg0: i32) -> (i32, i32) {
    %c0_i32 = arith.constant 0 : i32
    %c0_i32_0 = arith.constant 0 : i32
    return %arg0, %c0_i32 : i32, i32
  }
}

</mosaic_0001>

<bundles_post_ra>
// kernel: time_distributed_interpolation.1
= control target key start
LH: loop header
LB: loop body
LE: loop exit
PB: predicated region body
PF: predicated region fallthrough
CT: control target
= control target key end

     0   :  { %v188_v4 = vmov 0.0   ;;  %s306_s0 = inlined_call_operand.vmem [shape: f32[2,128], index: 0, kind: input, shape index: {}]   ;;  %s307_s1 = inlined_call_operand.vmem [shape: f32[128,256], index: 1, kind: input, shape index: {}]   ;;  %s308_s2 = inlined_call_operand.vmem [shape: f32[2,256], index: 2, kind: output, shape index: {}]  }
   0x1   :  { %v43_v0 = vld [vmem:[%s307_s1 + $0xf8] sm:$0xff]  ;;  %v42_v1 = vld [vmem:[%s307_s1 + $0xf0] sm:$0xff]  ;;  %v41_v2 = vld [vmem:[%s307_s1 + $0xe8] sm:$0xff]  ;;  %108 = vmatprep.mubr.f32.mxu0 %v188_v4 }
   0x2   :  { %44 = vmatprep.subr.mxu0 %v43_v0  ;;  %v40_v3 = vld [vmem:[%s307_s1 + $0xe0] sm:$0xff]  ;;  %v39_v5 = vld [vmem:[%s307_s1 + $0xd8] sm:$0xff]  ;;  %v38_v6 = vld [vmem:[%s307_s1 + $0xd0] sm:$0xff] }
   0x3   :  { %45 = vmatpush1.msra.mxu0 %v42_v1  ;;  %v37_v7 = vld [vmem:[%s307_s1 + $0xc8] sm:$0xff]  ;;  %v36_v8 = vld [vmem:[%s307_s1 + $0xc0] sm:$0xff]  ;;  %v35_v9 = vld [vmem:[%s307_s1 + $0xb8] sm:$0xff] }
   0x4   :  { %46 = vmatprep.subr.mxu0 %v41_v2  ;;  %v34_v10 = vld [vmem:[%s307_s1 + $0xb0] sm:$0xff]  ;;  %v33_v11 = vld [vmem:[%s307_s1 + $0xa8] sm:$0xff]  ;;  %v32_v12 = vld [vmem:[%s307_s1 + $0xa0] sm:$0xff] }
   0x5   :  { %47 = vmatpush1.msra.mxu0 %v40_v3  ;;  %v31_v13 = vld [vmem:[%s307_s1 + $0x98] sm:$0xff]  ;;  %v30_v14 = vld [vmem:[%s307_s1 + $0x90] sm:$0xff]  ;;  %v29_v15 = vld [vmem:[%s307_s1 + $0x88] sm:$0xff] }
   0x6   :  { %48 = vmatprep.subr.mxu0 %v39_v5  ;;  %v28_v16 = vld [vmem:[%s307_s1 + $0x80] sm:$0xff]  ;;  %v27_v17 = vld [vmem:[%s307_s1 + $0x78] sm:$0xff]  ;;  %v26_v18 = vld [vmem:[%s307_s1 + $0x70] sm:$0xff] }
   0x7   :  { %49 = vmatpush1.msra.mxu0 %v38_v6  ;;  %v25_v19 = vld [vmem:[%s307_s1 + $0x68] sm:$0xff]  ;;  %v24_v20 = vld [vmem:[%s307_s1 + $0x60] sm:$0xff]  ;;  %v23_v21 = vld [vmem:[%s307_s1 + $0x58] sm:$0xff] }
   0x8   :  { %50 = vmatprep.subr.mxu0 %v37_v7  ;;  %v22_v22 = vld [vmem:[%s307_s1 + $0x50] sm:$0xff]  ;;  %v21_v23 = vld [vmem:[%s307_s1 + $0x48] sm:$0xff]  ;;  %v20_v24 = vld [vmem:[%s307_s1 + $0x40] sm:$0xff] }
   0x9   :  { %51 = vmatpush1.msra.mxu0 %v36_v8  ;;  %v19_v25 = vld [vmem:[%s307_s1 + $0x38] sm:$0xff]  ;;  %v18_v26 = vld [vmem:[%s307_s1 + $0x30] sm:$0xff]  ;;  %v17_v27 = vld [vmem:[%s307_s1 + $0x28] sm:$0xff] }
   0xa   :  { %52 = vmatprep.subr.mxu0 %v35_v9  ;;  %v16_v28 = vld [vmem:[%s307_s1 + $0x20] sm:$0xff]  ;;  %v15_v29 = vld [vmem:[%s307_s1 + $0x18] sm:$0xff]  ;;  %v14_v30 = vld [vmem:[%s307_s1 + $0x10] sm:$0xff] }
   0xb   :  { %53 = vmatpush1.msra.mxu0 %v34_v10  ;;  %v13_v31 = vld [vmem:[%s307_s1 + $0x8] sm:$0xff]  ;;  %v12_v32 = vld [vmem:[%s307_s1] sm:$0xff] }
   0xc   :  { %54 = vmatprep.subr.mxu0 %v33_v11  ;;  %v11_v33 = vld [vmem:[%s306_s0] sm:$0xff] }
   0xd   :  { %55 = vmatpush1.msra.mxu0 %v32_v12 }
   0xe   :  { %56 = vmatprep.subr.mxu0 %v31_v13 }
   0xf   :  { %57 = vmatpush1.msra.mxu0 %v30_v14 }
  0x10   :  { %58 = vmatprep.subr.mxu0 %v29_v15 }
  0x11   :  { %59 = vmatpush1.msra.mxu0 %v28_v16 }
  0x12   :  { %60 = vmatprep.subr.mxu0 %v27_v17 }
  0x13   :  { %61 = vmatpush1.msra.mxu0 %v26_v18 }
  0x14   :  { %62 = vmatprep.subr.mxu0 %v25_v19 }
  0x15   :  { %63 = vmatpush1.msra.mxu0 %v24_v20 }
  0x16   :  { %64 = vmatprep.subr.mxu0 %v23_v21 }
  0x17   :  { %65 = vmatpush1.msra.mxu0 %v22_v22 }
  0x18   :  { %66 = vmatprep.subr.mxu0 %v21_v23 }
  0x19   :  { %67 = vmatpush1.msra.mxu0 %v20_v24 }
  0x1a   :  { %68 = vmatprep.subr.mxu0 %v19_v25 }
  0x1b   :  { %69 = vmatpush1.msra.mxu0 %v18_v26 }
  0x1c   :  { %70 = vmatprep.subr.mxu0 %v17_v27 }
  0x1d   :  { %71 = vmatpush1.msra.mxu0 %v16_v28 }
  0x1e   :  { %72 = vmatprep.subr.mxu0 %v15_v29 }
  0x1f   :  { %73 = vmatpush1.msra.mxu0 %v14_v30 }
  0x20   :  { %74 = vmatprep.subr.mxu0 %v13_v31 }
  0x21   :  { %75 = vmatpush1.msra.mxu0 %v12_v32 }
  0x22   :  { %109 = vmatmul.mubr.f32.vlgmr.msra.gmra.mxu0 %v11_v33 }
  0xe2   :  { %v110_v34 = vpop.f32.mrf.mxu0 }
  0xe4   :  { %v112_v35 = vpop.f32.mrf.mxu0 }
  0xe5   :  { %v117_v36 = vcombine.low %v110_v34, %v112_v35 }
  0xe7   :  { %184 = vst.sshfl [vmem:[#allocation2] sm:$0x33 pattern:$0x76325410] %v117_v36 }
  0xee   :  { %v161_v37 = vld [vmem:[#allocation2] sm:$0xf] }
  0xef   :  { %162 = vst [vmem:[%s308_s2] sm:$0xf] %v161_v37 }

</bundles_post_ra>
